<compile_context>
chip_gen: v5e
topology: v5e:2x2
jax: 0.10.0
libtpu: 0.0.40
codegen_flags: <defaults>
</compile_context>

<pallas_src>
import functools

import numpy as np
import jax
import jax.numpy as jnp
from jax.experimental import pallas as pl
from jax.experimental.pallas import tpu as pltpu


def _pick_h_tile(H):
    """H tile size: a multiple of 8 that divides H (else the full extent)."""
    if H % 8 != 0:
        return H                       # single tile; block equals full extent
    for th in (16, 32, 24, 8):
        if H % th == 0:
            return th
    return H


def _correction_kernel(mask_ref, prev_ref, next_ref, d_ref, std_ref, out_ref,
                       buf, *, depth):
    # mask_ref: (4, L)        f32 0/1 lane-validity masks for the folded (W,D) axis
    # prev_ref: (1, 1, C, L)  deform plane just above this H tile (all channels)
    # next_ref: (1, 1, C, L)  deform plane just below this H tile
    # d_ref   : (1, C, TH, L) deform tile
    # std_ref : (1, 1, TH, L) std tile
    # out_ref : (1, C, TH, L)
    # buf     : VMEM (TH+2, L) f32 halo scratch for the H-axis 3-tap
    C, TH, L = d_ref.shape[1], d_ref.shape[2], d_ref.shape[3]
    D = depth

    h = pl.program_id(1)
    nh = pl.num_programs(1)
    # Halo rows that fall outside the real volume contribute zero (padding=1).
    top_scale = jnp.where(h == 0, 0.0, 1.0)
    bot_scale = jnp.where(h == nh - 1, 0.0, 1.0)

    # p = clamp(exp(-3*std), 0, 1): once per (batch, H-tile), reused for all C.
    p = jnp.clip(jnp.exp(-3.0 * std_ref[0, 0]), 0.0, 1.0)       # (TH, L)
    q = (1.0 - p) * (1.0 / 26.0)

    m_pd = mask_ref[pl.ds(0, 1), :]    # d-1 neighbour exists
    m_nd = mask_ref[pl.ds(1, 1), :]    # d+1 neighbour exists
    m_pw = mask_ref[pl.ds(2, 1), :]    # w-1 neighbour exists
    m_nw = mask_ref[pl.ds(3, 1), :]    # w+1 neighbour exists

    def plane_sum(a):
        """3x3 sum over the folded (W, D) lane axis (centre included)."""
        sd = (a + pltpu.roll(a, shift=1, axis=1) * m_pd
                + pltpu.roll(a, shift=L - 1, axis=1) * m_nd)
        return (sd + pltpu.roll(sd, shift=D, axis=1) * m_pw
                   + pltpu.roll(sd, shift=L - D, axis=1) * m_nw)

    # TODO(synk): switch the channel loop to lax.fori_loop if C grows beyond ~4
    # (static unroll multiplies the live (TH, L) temporaries per channel).
    for c in range(C):                               # C == 3 for a deform field
        x = d_ref[0, c]                                              # (TH, L)
        # Per-row 3x3 sums, with the global prev/next rows in the halo slots.
        buf[pl.ds(0, 1), :] = plane_sum(prev_ref[0, 0, pl.ds(c, 1), :]) * top_scale
        buf[pl.ds(1, TH), :] = plane_sum(x)
        buf[pl.ds(TH + 1, 1), :] = plane_sum(next_ref[0, 0, pl.ds(c, 1), :]) * bot_scale
        # 3-tap along H via sublane-offset reads of the halo scratch.
        box = (buf[pl.ds(0, TH), :]
               + buf[pl.ds(1, TH), :]
               + buf[pl.ds(2, TH), :])                # full 3x3x3 box sum
        # 26-neighbour sum = box sum minus the centre sample; blend with deform.
        out_ref[0, c] = (p * x + q * (box - x)).astype(out_ref.dtype)


@jax.jit
def correction_forward(deform, std):
    """deform: (B, C, H, W, D) f32; std: (B, 1, H, W, D) f32 -> corrected deform."""
    B, C, H, W, D = deform.shape
    L = W * D
    TH = _pick_h_tile(H)
    nh = H // TH

    # Lane-dense layout: fold (W, D) into a single trailing axis of length W*D.
    x = deform.reshape(B, C, H, L)
    s = std.reshape(B, 1, H, L)

    # Halo planes for the H-axis 3-tap: tile h needs global rows h*TH - 1 and
    # h*TH + TH (clamped; out-of-volume cases are zeroed in the kernel).
    # Shaped (B, nh, C, L) so the block's last two dims are full extents.
    hs = np.arange(nh)
    prev_rows = np.maximum(hs * TH - 1, 0)
    next_rows = np.minimum(hs * TH + TH, H - 1)
    halo_prev = jnp.transpose(x[:, :, prev_rows, :], (0, 2, 1, 3))
    halo_next = jnp.transpose(x[:, :, next_rows, :], (0, 2, 1, 3))

    # 0/1 lane-validity masks for the folded (W, D) axis, built once on host.
    lane = np.arange(L)
    masks = jnp.asarray(np.stack([
        (lane % D) >= 1,              # d-1 exists
        (lane % D) <= D - 2,          # d+1 exists
        lane >= D,                    # w-1 exists
        lane < (W - 1) * D,           # w+1 exists
    ]).astype(np.float32))            # (4, L)

    vol = H * L
    cost = pl.CostEstimate(
        flops=16 * B * C * vol,
        transcendentals=B * vol,
        bytes_accessed=4 * (2 * B * C * vol + B * vol),
    )

    out = pl.pallas_call(
        functools.partial(_correction_kernel, depth=D),
        out_shape=jax.ShapeDtypeStruct((B, C, H, L), deform.dtype),
        grid_spec=pltpu.PrefetchScalarGridSpec(
            num_scalar_prefetch=0,
            grid=(B, nh),
            in_specs=[
                pl.BlockSpec((4, L), lambda b, h: (0, 0)),
                pl.BlockSpec((1, 1, C, L), lambda b, h: (b, h, 0, 0)),
                pl.BlockSpec((1, 1, C, L), lambda b, h: (b, h, 0, 0)),
                pl.BlockSpec((1, C, TH, L), lambda b, h: (b, 0, h, 0)),
                pl.BlockSpec((1, 1, TH, L), lambda b, h: (b, 0, h, 0)),
            ],
            out_specs=pl.BlockSpec((1, C, TH, L), lambda b, h: (b, 0, h, 0)),
            scratch_shapes=[pltpu.VMEM((TH + 2, L), jnp.float32)],
        ),
        compiler_params=pltpu.CompilerParams(
            dimension_semantics=("parallel", "parallel"),
            vmem_limit_bytes=48 * 1024 * 1024,
        ),
        cost_estimate=cost,
    )(masks, halo_prev, halo_next, x, s)

    return out.reshape(B, C, H, W, D)


def correction_reference(deform, std):
    """Pure-JAX reference (zero-padded shift-and-add depthwise conv)."""
    B, C, H, W, D = deform.shape
    dpad = jnp.pad(deform, ((0, 0), (0, 0), (1, 1), (1, 1), (1, 1)))
    acc = jnp.zeros_like(deform)
    for dh in range(3):
        for dw in range(3):
            for dd in range(3):
                if dh == 1 and dw == 1 and dd == 1:
                    continue
                acc = acc + dpad[:, :, dh:dh + H, dw:dw + W, dd:dd + D]
    smoothed = acc / 26.0
    p = jnp.clip(jnp.exp(-3.0 * std), 0.0, 1.0)
    return p * deform + (1.0 - p) * smoothed


if __name__ == "__main__":
    # Small shapes consistent with the module: deform (B, 3, H, W, D),
    # std (B, 1, H, W, D).  H=32 -> two H tiles of 16, exercising the halo
    # seam between tiles.  Correction has no learnable parameters
    # (out_layers is unused in forward).
    B, C, H, W, D = 2, 3, 32, 8, 8
    key = jax.random.PRNGKey(0)
    k1, k2 = jax.random.split(key)
    deform = jax.random.normal(k1, (B, C, H, W, D), dtype=jnp.float32)
    std = jax.nn.softplus(jax.random.normal(k2, (B, 1, H, W, D), dtype=jnp.float32))

    out = jax.block_until_ready(correction_forward(deform, std))

    ref = correction_reference(deform, std)
    assert out.shape == (B, C, H, W, D)
    assert jnp.allclose(out, ref, atol=1e-5, rtol=1e-5), "mismatch vs reference"

    print("KERNEL_OK")
</pallas_src>

<mosaic_0001>
module attributes {stable_mosaic.version = 11 : i64} {
  func.func @_correction_kernel(%arg0: i32, %arg1: i32, %arg2: memref<4x64xf32, #tpu.memory_space<vmem>>, %arg3: memref<1x1x3x64xf32, #tpu.memory_space<vmem>>, %arg4: memref<1x1x3x64xf32, #tpu.memory_space<vmem>>, %arg5: memref<1x3x16x64xf32, #tpu.memory_space<vmem>>, %arg6: memref<1x1x16x64xf32, #tpu.memory_space<vmem>>, %arg7: memref<1x3x16x64xf32, #tpu.memory_space<vmem>>, %arg8: memref<18x64xf32, #tpu.memory_space<vmem>>) attributes {dimension_semantics = [#tpu.dimension_semantics<parallel>, #tpu.dimension_semantics<parallel>], iteration_bounds = array<i64: 2, 2>, scalar_prefetch = 0 : i64, scratch_operands = 1 : i64, tpu.core_type = #tpu.core_type<tc>, window_params = [{pipeline_mode = #tpu.pipeline_mode<synchronous>, transform_indices = @transform_0, window_bounds = array<i64: 4, 64>}, {transform_indices = @transform_1, window_bounds = array<i64: 1, 1, 3, 64>}, {transform_indices = @transform_2, window_bounds = array<i64: 1, 1, 3, 64>}, {transform_indices = @transform_3, window_bounds = array<i64: 1, 3, 16, 64>}, {transform_indices = @transform_4, window_bounds = array<i64: 1, 1, 16, 64>}, {transform_indices = @transform_5, window_bounds = array<i64: 1, 3, 16, 64>}]} {
    %c0_i32 = arith.constant 0 : i32
    %0 = arith.cmpi eq, %arg1, %c0_i32 : i32
    %cst = arith.constant 0.000000e+00 : f32
    %cst_0 = arith.constant 1.000000e+00 : f32
    %1 = arith.select %0, %cst, %cst_0 : f32
    %c1_i32 = arith.constant 1 : i32
    %2 = arith.cmpi eq, %arg1, %c1_i32 : i32
    %cst_1 = arith.constant 0.000000e+00 : f32
    %cst_2 = arith.constant 1.000000e+00 : f32
    %3 = arith.select %2, %cst_1, %cst_2 : f32
    %c0 = arith.constant 0 : index
    %c0_3 = arith.constant 0 : index
    %c0_4 = arith.constant 0 : index
    %c0_5 = arith.constant 0 : index
    %4 = vector.load %arg6[%c0, %c0_3, %c0_4, %c0_5] : memref<1x1x16x64xf32, #tpu.memory_space<vmem>>, vector<1x1x16x64xf32>
    %5 = vector.shape_cast %4 : vector<1x1x16x64xf32> to vector<16x64xf32>
    %cst_6 = arith.constant -3.000000e+00 : f32
    %6 = vector.broadcast %cst_6 : f32 to vector<16x64xf32>
    %7 = arith.mulf %6, %5 : vector<16x64xf32>
    %8 = math.exp %7 : vector<16x64xf32>
    %cst_7 = arith.constant 0.000000e+00 : f32
    %cst_8 = arith.constant 1.000000e+00 : f32
    %9 = vector.broadcast %cst_7 : f32 to vector<16x64xf32>
    %10 = arith.maximumf %9, %8 : vector<16x64xf32>
    %11 = vector.broadcast %cst_8 : f32 to vector<16x64xf32>
    %12 = arith.minimumf %11, %10 : vector<16x64xf32>
    %cst_9 = arith.constant 1.000000e+00 : f32
    %13 = vector.broadcast %cst_9 : f32 to vector<16x64xf32>
    %14 = arith.subf %13, %12 : vector<16x64xf32>
    %cst_10 = arith.constant 0.0384615399 : f32
    %15 = vector.broadcast %cst_10 : f32 to vector<16x64xf32>
    %16 = arith.mulf %14, %15 : vector<16x64xf32>
    %c0_11 = arith.constant 0 : index
    %c0_12 = arith.constant 0 : index
    %17 = vector.load %arg2[%c0_11, %c0_12] : memref<4x64xf32, #tpu.memory_space<vmem>>, vector<1x64xf32>
    %c1 = arith.constant 1 : index
    %c0_13 = arith.constant 0 : index
    %18 = vector.load %arg2[%c1, %c0_13] : memref<4x64xf32, #tpu.memory_space<vmem>>, vector<1x64xf32>
    %c2 = arith.constant 2 : index
    %c0_14 = arith.constant 0 : index
    %19 = vector.load %arg2[%c2, %c0_14] : memref<4x64xf32, #tpu.memory_space<vmem>>, vector<1x64xf32>
    %c3 = arith.constant 3 : index
    %c0_15 = arith.constant 0 : index
    %20 = vector.load %arg2[%c3, %c0_15] : memref<4x64xf32, #tpu.memory_space<vmem>>, vector<1x64xf32>
    %c0_16 = arith.constant 0 : index
    %c0_17 = arith.constant 0 : index
    %c0_18 = arith.constant 0 : index
    %c0_19 = arith.constant 0 : index
    %21 = vector.load %arg5[%c0_16, %c0_17, %c0_18, %c0_19] : memref<1x3x16x64xf32, #tpu.memory_space<vmem>>, vector<1x1x16x64xf32>
    %22 = vector.shape_cast %21 : vector<1x1x16x64xf32> to vector<16x64xf32>
    %c0_20 = arith.constant 0 : index
    %c0_21 = arith.constant 0 : index
    %c0_22 = arith.constant 0 : index
    %c0_23 = arith.constant 0 : index
    %23 = vector.load %arg3[%c0_20, %c0_21, %c0_22, %c0_23] : memref<1x1x3x64xf32, #tpu.memory_space<vmem>>, vector<1x1x1x64xf32>
    %24 = vector.shape_cast %23 : vector<1x1x1x64xf32> to vector<1x64xf32>
    %c1_i32_24 = arith.constant 1 : i32
    %25 = tpu.dynamic_rotate %24 by %c1_i32_24 dim 1 : vector<1x64xf32>, i32 -> vector<1x64xf32>
    %26 = arith.mulf %25, %17 : vector<1x64xf32>
    %27 = arith.addf %24, %26 : vector<1x64xf32>
    %c63_i32 = arith.constant 63 : i32
    %28 = tpu.dynamic_rotate %24 by %c63_i32 dim 1 : vector<1x64xf32>, i32 -> vector<1x64xf32>
    %29 = arith.mulf %28, %18 : vector<1x64xf32>
    %30 = arith.addf %27, %29 : vector<1x64xf32>
    %c8_i32 = arith.constant 8 : i32
    %31 = tpu.dynamic_rotate %30 by %c8_i32 dim 1 : vector<1x64xf32>, i32 -> vector<1x64xf32>
    %32 = arith.mulf %31, %19 : vector<1x64xf32>
    %33 = arith.addf %30, %32 : vector<1x64xf32>
    %c56_i32 = arith.constant 56 : i32
    %34 = tpu.dynamic_rotate %30 by %c56_i32 dim 1 : vector<1x64xf32>, i32 -> vector<1x64xf32>
    %35 = arith.mulf %34, %20 : vector<1x64xf32>
    %36 = arith.addf %33, %35 : vector<1x64xf32>
    %37 = vector.broadcast %1 : f32 to vector<1x64xf32>
    %38 = arith.mulf %36, %37 : vector<1x64xf32>
    %c0_25 = arith.constant 0 : index
    %c0_26 = arith.constant 0 : index
    %39 = vector.load %arg8[%c0_25, %c0_26] : memref<18x64xf32, #tpu.memory_space<vmem>>, vector<1x64xf32>
    tpu.vector_store %arg8[%c0_25, %c0_26], %38 {strides = array<i32>} : memref<18x64xf32, #tpu.memory_space<vmem>>, vector<1x64xf32>,
    %c1_i32_27 = arith.constant 1 : i32
    %40 = tpu.dynamic_rotate %22 by %c1_i32_27 dim 1 : vector<16x64xf32>, i32 -> vector<16x64xf32>
    %41 = vector.broadcast %17 : vector<1x64xf32> to vector<16x64xf32>
    %42 = arith.mulf %40, %41 : vector<16x64xf32>
    %43 = arith.addf %22, %42 : vector<16x64xf32>
    %c63_i32_28 = arith.constant 63 : i32
    %44 = tpu.dynamic_rotate %22 by %c63_i32_28 dim 1 : vector<16x64xf32>, i32 -> vector<16x64xf32>
    %45 = vector.broadcast %18 : vector<1x64xf32> to vector<16x64xf32>
    %46 = arith.mulf %44, %45 : vector<16x64xf32>
    %47 = arith.addf %43, %46 : vector<16x64xf32>
    %c8_i32_29 = arith.constant 8 : i32
    %48 = tpu.dynamic_rotate %47 by %c8_i32_29 dim 1 : vector<16x64xf32>, i32 -> vector<16x64xf32>
    %49 = vector.broadcast %19 : vector<1x64xf32> to vector<16x64xf32>
    %50 = arith.mulf %48, %49 : vector<16x64xf32>
    %51 = arith.addf %47, %50 : vector<16x64xf32>
    %c56_i32_30 = arith.constant 56 : i32
    %52 = tpu.dynamic_rotate %47 by %c56_i32_30 dim 1 : vector<16x64xf32>, i32 -> vector<16x64xf32>
    %53 = vector.broadcast %20 : vector<1x64xf32> to vector<16x64xf32>
    %54 = arith.mulf %52, %53 : vector<16x64xf32>
    %55 = arith.addf %51, %54 : vector<16x64xf32>
    %c1_31 = arith.constant 1 : index
    %c0_32 = arith.constant 0 : index
    %56 = vector.load %arg8[%c1_31, %c0_32] : memref<18x64xf32, #tpu.memory_space<vmem>>, vector<16x64xf32>
    tpu.vector_store %arg8[%c1_31, %c0_32], %55 {strides = array<i32>} : memref<18x64xf32, #tpu.memory_space<vmem>>, vector<16x64xf32>,
    %c0_33 = arith.constant 0 : index
    %c0_34 = arith.constant 0 : index
    %c0_35 = arith.constant 0 : index
    %c0_36 = arith.constant 0 : index
    %57 = vector.load %arg4[%c0_33, %c0_34, %c0_35, %c0_36] : memref<1x1x3x64xf32, #tpu.memory_space<vmem>>, vector<1x1x1x64xf32>
    %58 = vector.shape_cast %57 : vector<1x1x1x64xf32> to vector<1x64xf32>
    %c1_i32_37 = arith.constant 1 : i32
    %59 = tpu.dynamic_rotate %58 by %c1_i32_37 dim 1 : vector<1x64xf32>, i32 -> vector<1x64xf32>
    %60 = arith.mulf %59, %17 : vector<1x64xf32>
    %61 = arith.addf %58, %60 : vector<1x64xf32>
    %c63_i32_38 = arith.constant 63 : i32
    %62 = tpu.dynamic_rotate %58 by %c63_i32_38 dim 1 : vector<1x64xf32>, i32 -> vector<1x64xf32>
    %63 = arith.mulf %62, %18 : vector<1x64xf32>
    %64 = arith.addf %61, %63 : vector<1x64xf32>
    %c8_i32_39 = arith.constant 8 : i32
    %65 = tpu.dynamic_rotate %64 by %c8_i32_39 dim 1 : vector<1x64xf32>, i32 -> vector<1x64xf32>
    %66 = arith.mulf %65, %19 : vector<1x64xf32>
    %67 = arith.addf %64, %66 : vector<1x64xf32>
    %c56_i32_40 = arith.constant 56 : i32
    %68 = tpu.dynamic_rotate %64 by %c56_i32_40 dim 1 : vector<1x64xf32>, i32 -> vector<1x64xf32>
    %69 = arith.mulf %68, %20 : vector<1x64xf32>
    %70 = arith.addf %67, %69 : vector<1x64xf32>
    %71 = vector.broadcast %3 : f32 to vector<1x64xf32>
    %72 = arith.mulf %70, %71 : vector<1x64xf32>
    %c17 = arith.constant 17 : index
    %c0_41 = arith.constant 0 : index
    %73 = vector.load %arg8[%c17, %c0_41] : memref<18x64xf32, #tpu.memory_space<vmem>>, vector<1x64xf32>
    tpu.vector_store %arg8[%c17, %c0_41], %72 {strides = array<i32>} : memref<18x64xf32, #tpu.memory_space<vmem>>, vector<1x64xf32>,
    %c0_42 = arith.constant 0 : index
    %c0_43 = arith.constant 0 : index
    %74 = vector.load %arg8[%c0_42, %c0_43] : memref<18x64xf32, #tpu.memory_space<vmem>>, vector<16x64xf32>
    %c1_44 = arith.constant 1 : index
    %c0_45 = arith.constant 0 : index
    %75 = vector.load %arg8[%c1_44, %c0_45] : memref<18x64xf32, #tpu.memory_space<vmem>>, vector<16x64xf32>
    %76 = arith.addf %74, %75 : vector<16x64xf32>
    %c2_46 = arith.constant 2 : index
    %c0_47 = arith.constant 0 : index
    %77 = vector.load %arg8[%c2_46, %c0_47] : memref<18x64xf32, #tpu.memory_space<vmem>>, vector<16x64xf32>
    %78 = arith.addf %76, %77 : vector<16x64xf32>
    %79 = arith.mulf %12, %22 : vector<16x64xf32>
    %80 = arith.subf %78, %22 : vector<16x64xf32>
    %81 = arith.mulf %16, %80 : vector<16x64xf32>
    %82 = arith.addf %79, %81 : vector<16x64xf32>
    %c0_48 = arith.constant 0 : index
    %c0_49 = arith.constant 0 : index
    %c0_50 = arith.constant 0 : index
    %c0_51 = arith.constant 0 : index
    %83 = vector.load %arg7[%c0_48, %c0_49, %c0_50, %c0_51] : memref<1x3x16x64xf32, #tpu.memory_space<vmem>>, vector<1x1x16x64xf32>
    %84 = vector.shape_cast %83 : vector<1x1x16x64xf32> to vector<16x64xf32>
    %85 = vector.shape_cast %82 : vector<16x64xf32> to vector<1x1x16x64xf32>
    tpu.vector_store %arg7[%c0_48, %c0_49, %c0_50, %c0_51], %85 {strides = array<i32>} : memref<1x3x16x64xf32, #tpu.memory_space<vmem>>, vector<1x1x16x64xf32>,
    %c0_52 = arith.constant 0 : index
    %c1_53 = arith.constant 1 : index
    %c0_54 = arith.constant 0 : index
    %c0_55 = arith.constant 0 : index
    %86 = vector.load %arg5[%c0_52, %c1_53, %c0_54, %c0_55] : memref<1x3x16x64xf32, #tpu.memory_space<vmem>>, vector<1x1x16x64xf32>
    %87 = vector.shape_cast %86 : vector<1x1x16x64xf32> to vector<16x64xf32>
    %c0_56 = arith.constant 0 : index
    %c0_57 = arith.constant 0 : index
    %c1_58 = arith.constant 1 : index
    %c0_59 = arith.constant 0 : index
    %88 = vector.load %arg3[%c0_56, %c0_57, %c1_58, %c0_59] : memref<1x1x3x64xf32, #tpu.memory_space<vmem>>, vector<1x1x1x64xf32>
    %89 = vector.shape_cast %88 : vector<1x1x1x64xf32> to vector<1x64xf32>
    %c1_i32_60 = arith.constant 1 : i32
    %90 = tpu.dynamic_rotate %89 by %c1_i32_60 dim 1 : vector<1x64xf32>, i32 -> vector<1x64xf32>
    %91 = arith.mulf %90, %17 : vector<1x64xf32>
    %92 = arith.addf %89, %91 : vector<1x64xf32>
    %c63_i32_61 = arith.constant 63 : i32
    %93 = tpu.dynamic_rotate %89 by %c63_i32_61 dim 1 : vector<1x64xf32>, i32 -> vector<1x64xf32>
    %94 = arith.mulf %93, %18 : vector<1x64xf32>
    %95 = arith.addf %92, %94 : vector<1x64xf32>
    %c8_i32_62 = arith.constant 8 : i32
    %96 = tpu.dynamic_rotate %95 by %c8_i32_62 dim 1 : vector<1x64xf32>, i32 -> vector<1x64xf32>
    %97 = arith.mulf %96, %19 : vector<1x64xf32>
    %98 = arith.addf %95, %97 : vector<1x64xf32>
    %c56_i32_63 = arith.constant 56 : i32
    %99 = tpu.dynamic_rotate %95 by %c56_i32_63 dim 1 : vector<1x64xf32>, i32 -> vector<1x64xf32>
    %100 = arith.mulf %99, %20 : vector<1x64xf32>
    %101 = arith.addf %98, %100 : vector<1x64xf32>
    %102 = vector.broadcast %1 : f32 to vector<1x64xf32>
    %103 = arith.mulf %101, %102 : vector<1x64xf32>
    %c0_64 = arith.constant 0 : index
    %c0_65 = arith.constant 0 : index
    %104 = vector.load %arg8[%c0_64, %c0_65] : memref<18x64xf32, #tpu.memory_space<vmem>>, vector<1x64xf32>
    tpu.vector_store %arg8[%c0_64, %c0_65], %103 {strides = array<i32>} : memref<18x64xf32, #tpu.memory_space<vmem>>, vector<1x64xf32>,
    %c1_i32_66 = arith.constant 1 : i32
    %105 = tpu.dynamic_rotate %87 by %c1_i32_66 dim 1 : vector<16x64xf32>, i32 -> vector<16x64xf32>
    %106 = vector.broadcast %17 : vector<1x64xf32> to vector<16x64xf32>
    %107 = arith.mulf %105, %106 : vector<16x64xf32>
    %108 = arith.addf %87, %107 : vector<16x64xf32>
    %c63_i32_67 = arith.constant 63 : i32
    %109 = tpu.dynamic_rotate %87 by %c63_i32_67 dim 1 : vector<16x64xf32>, i32 -> vector<16x64xf32>
    %110 = vector.broadcast %18 : vector<1x64xf32> to vector<16x64xf32>
    %111 = arith.mulf %109, %110 : vector<16x64xf32>
    %112 = arith.addf %108, %111 : vector<16x64xf32>
    %c8_i32_68 = arith.constant 8 : i32
    %113 = tpu.dynamic_rotate %112 by %c8_i32_68 dim 1 : vector<16x64xf32>, i32 -> vector<16x64xf32>
    %114 = vector.broadcast %19 : vector<1x64xf32> to vector<16x64xf32>
    %115 = arith.mulf %113, %114 : vector<16x64xf32>
    %116 = arith.addf %112, %115 : vector<16x64xf32>
    %c56_i32_69 = arith.constant 56 : i32
    %117 = tpu.dynamic_rotate %112 by %c56_i32_69 dim 1 : vector<16x64xf32>, i32 -> vector<16x64xf32>
    %118 = vector.broadcast %20 : vector<1x64xf32> to vector<16x64xf32>
    %119 = arith.mulf %117, %118 : vector<16x64xf32>
    %120 = arith.addf %116, %119 : vector<16x64xf32>
    %c1_70 = arith.constant 1 : index
    %c0_71 = arith.constant 0 : index
    %121 = vector.load %arg8[%c1_70, %c0_71] : memref<18x64xf32, #tpu.memory_space<vmem>>, vector<16x64xf32>
    tpu.vector_store %arg8[%c1_70, %c0_71], %120 {strides = array<i32>} : memref<18x64xf32, #tpu.memory_space<vmem>>, vector<16x64xf32>,
    %c0_72 = arith.constant 0 : index
    %c0_73 = arith.constant 0 : index
    %c1_74 = arith.constant 1 : index
    %c0_75 = arith.constant 0 : index
    %122 = vector.load %arg4[%c0_72, %c0_73, %c1_74, %c0_75] : memref<1x1x3x64xf32, #tpu.memory_space<vmem>>, vector<1x1x1x64xf32>
    %123 = vector.shape_cast %122 : vector<1x1x1x64xf32> to vector<1x64xf32>
    %c1_i32_76 = arith.constant 1 : i32
    %124 = tpu.dynamic_rotate %123 by %c1_i32_76 dim 1 : vector<1x64xf32>, i32 -> vector<1x64xf32>
    %125 = arith.mulf %124, %17 : vector<1x64xf32>
    %126 = arith.addf %123, %125 : vector<1x64xf32>
    %c63_i32_77 = arith.constant 63 : i32
    %127 = tpu.dynamic_rotate %123 by %c63_i32_77 dim 1 : vector<1x64xf32>, i32 -> vector<1x64xf32>
    %128 = arith.mulf %127, %18 : vector<1x64xf32>
    %129 = arith.addf %126, %128 : vector<1x64xf32>
    %c8_i32_78 = arith.constant 8 : i32
    %130 = tpu.dynamic_rotate %129 by %c8_i32_78 dim 1 : vector<1x64xf32>, i32 -> vector<1x64xf32>
    %131 = arith.mulf %130, %19 : vector<1x64xf32>
    %132 = arith.addf %129, %131 : vector<1x64xf32>
    %c56_i32_79 = arith.constant 56 : i32
    %133 = tpu.dynamic_rotate %129 by %c56_i32_79 dim 1 : vector<1x64xf32>, i32 -> vector<1x64xf32>
    %134 = arith.mulf %133, %20 : vector<1x64xf32>
    %135 = arith.addf %132, %134 : vector<1x64xf32>
    %136 = vector.broadcast %3 : f32 to vector<1x64xf32>
    %137 = arith.mulf %135, %136 : vector<1x64xf32>
    %c17_80 = arith.constant 17 : index
    %c0_81 = arith.constant 0 : index
    %138 = vector.load %arg8[%c17_80, %c0_81] : memref<18x64xf32, #tpu.memory_space<vmem>>, vector<1x64xf32>
    tpu.vector_store %arg8[%c17_80, %c0_81], %137 {strides = array<i32>} : memref<18x64xf32, #tpu.memory_space<vmem>>, vector<1x64xf32>,
    %c0_82 = arith.constant 0 : index
    %c0_83 = arith.constant 0 : index
    %139 = vector.load %arg8[%c0_82, %c0_83] : memref<18x64xf32, #tpu.memory_space<vmem>>, vector<16x64xf32>
    %c1_84 = arith.constant 1 : index
    %c0_85 = arith.constant 0 : index
    %140 = vector.load %arg8[%c1_84, %c0_85] : memref<18x64xf32, #tpu.memory_space<vmem>>, vector<16x64xf32>
    %141 = arith.addf %139, %140 : vector<16x64xf32>
    %c2_86 = arith.constant 2 : index
    %c0_87 = arith.constant 0 : index
    %142 = vector.load %arg8[%c2_86, %c0_87] : memref<18x64xf32, #tpu.memory_space<vmem>>, vector<16x64xf32>
    %143 = arith.addf %141, %142 : vector<16x64xf32>
    %144 = arith.mulf %12, %87 : vector<16x64xf32>
    %145 = arith.subf %143, %87 : vector<16x64xf32>
    %146 = arith.mulf %16, %145 : vector<16x64xf32>
    %147 = arith.addf %144, %146 : vector<16x64xf32>
    %c0_88 = arith.constant 0 : index
    %c1_89 = arith.constant 1 : index
    %c0_90 = arith.constant 0 : index
    %c0_91 = arith.constant 0 : index
    %148 = vector.load %arg7[%c0_88, %c1_89, %c0_90, %c0_91] : memref<1x3x16x64xf32, #tpu.memory_space<vmem>>, vector<1x1x16x64xf32>
    %149 = vector.shape_cast %148 : vector<1x1x16x64xf32> to vector<16x64xf32>
    %150 = vector.shape_cast %147 : vector<16x64xf32> to vector<1x1x16x64xf32>
    tpu.vector_store %arg7[%c0_88, %c1_89, %c0_90, %c0_91], %150 {strides = array<i32>} : memref<1x3x16x64xf32, #tpu.memory_space<vmem>>, vector<1x1x16x64xf32>,
    %c0_92 = arith.constant 0 : index
    %c2_93 = arith.constant 2 : index
    %c0_94 = arith.constant 0 : index
    %c0_95 = arith.constant 0 : index
    %151 = vector.load %arg5[%c0_92, %c2_93, %c0_94, %c0_95] : memref<1x3x16x64xf32, #tpu.memory_space<vmem>>, vector<1x1x16x64xf32>
    %152 = vector.shape_cast %151 : vector<1x1x16x64xf32> to vector<16x64xf32>
    %c0_96 = arith.constant 0 : index
    %c0_97 = arith.constant 0 : index
    %c2_98 = arith.constant 2 : index
    %c0_99 = arith.constant 0 : index
    %153 = vector.load %arg3[%c0_96, %c0_97, %c2_98, %c0_99] : memref<1x1x3x64xf32, #tpu.memory_space<vmem>>, vector<1x1x1x64xf32>
    %154 = vector.shape_cast %153 : vector<1x1x1x64xf32> to vector<1x64xf32>
    %c1_i32_100 = arith.constant 1 : i32
    %155 = tpu.dynamic_rotate %154 by %c1_i32_100 dim 1 : vector<1x64xf32>, i32 -> vector<1x64xf32>
    %156 = arith.mulf %155, %17 : vector<1x64xf32>
    %157 = arith.addf %154, %156 : vector<1x64xf32>
    %c63_i32_101 = arith.constant 63 : i32
    %158 = tpu.dynamic_rotate %154 by %c63_i32_101 dim 1 : vector<1x64xf32>, i32 -> vector<1x64xf32>
    %159 = arith.mulf %158, %18 : vector<1x64xf32>
    %160 = arith.addf %157, %159 : vector<1x64xf32>
    %c8_i32_102 = arith.constant 8 : i32
    %161 = tpu.dynamic_rotate %160 by %c8_i32_102 dim 1 : vector<1x64xf32>, i32 -> vector<1x64xf32>
    %162 = arith.mulf %161, %19 : vector<1x64xf32>
    %163 = arith.addf %160, %162 : vector<1x64xf32>
    %c56_i32_103 = arith.constant 56 : i32
    %164 = tpu.dynamic_rotate %160 by %c56_i32_103 dim 1 : vector<1x64xf32>, i32 -> vector<1x64xf32>
    %165 = arith.mulf %164, %20 : vector<1x64xf32>
    %166 = arith.addf %163, %165 : vector<1x64xf32>
    %167 = vector.broadcast %1 : f32 to vector<1x64xf32>
    %168 = arith.mulf %166, %167 : vector<1x64xf32>
    %c0_104 = arith.constant 0 : index
    %c0_105 = arith.constant 0 : index
    %169 = vector.load %arg8[%c0_104, %c0_105] : memref<18x64xf32, #tpu.memory_space<vmem>>, vector<1x64xf32>
    tpu.vector_store %arg8[%c0_104, %c0_105], %168 {strides = array<i32>} : memref<18x64xf32, #tpu.memory_space<vmem>>, vector<1x64xf32>,
    %c1_i32_106 = arith.constant 1 : i32
    %170 = tpu.dynamic_rotate %152 by %c1_i32_106 dim 1 : vector<16x64xf32>, i32 -> vector<16x64xf32>
    %171 = vector.broadcast %17 : vector<1x64xf32> to vector<16x64xf32>
    %172 = arith.mulf %170, %171 : vector<16x64xf32>
    %173 = arith.addf %152, %172 : vector<16x64xf32>
    %c63_i32_107 = arith.constant 63 : i32
    %174 = tpu.dynamic_rotate %152 by %c63_i32_107 dim 1 : vector<16x64xf32>, i32 -> vector<16x64xf32>
    %175 = vector.broadcast %18 : vector<1x64xf32> to vector<16x64xf32>
    %176 = arith.mulf %174, %175 : vector<16x64xf32>
    %177 = arith.addf %173, %176 : vector<16x64xf32>
    %c8_i32_108 = arith.constant 8 : i32
    %178 = tpu.dynamic_rotate %177 by %c8_i32_108 dim 1 : vector<16x64xf32>, i32 -> vector<16x64xf32>
    %179 = vector.broadcast %19 : vector<1x64xf32> to vector<16x64xf32>
    %180 = arith.mulf %178, %179 : vector<16x64xf32>
    %181 = arith.addf %177, %180 : vector<16x64xf32>
    %c56_i32_109 = arith.constant 56 : i32
    %182 = tpu.dynamic_rotate %177 by %c56_i32_109 dim 1 : vector<16x64xf32>, i32 -> vector<16x64xf32>
    %183 = vector.broadcast %20 : vector<1x64xf32> to vector<16x64xf32>
    %184 = arith.mulf %182, %183 : vector<16x64xf32>
    %185 = arith.addf %181, %184 : vector<16x64xf32>
    %c1_110 = arith.constant 1 : index
    %c0_111 = arith.constant 0 : index
    %186 = vector.load %arg8[%c1_110, %c0_111] : memref<18x64xf32, #tpu.memory_space<vmem>>, vector<16x64xf32>
    tpu.vector_store %arg8[%c1_110, %c0_111], %185 {strides = array<i32>} : memref<18x64xf32, #tpu.memory_space<vmem>>, vector<16x64xf32>,
    %c0_112 = arith.constant 0 : index
    %c0_113 = arith.constant 0 : index
    %c2_114 = arith.constant 2 : index
    %c0_115 = arith.constant 0 : index
    %187 = vector.load %arg4[%c0_112, %c0_113, %c2_114, %c0_115] : memref<1x1x3x64xf32, #tpu.memory_space<vmem>>, vector<1x1x1x64xf32>
    %188 = vector.shape_cast %187 : vector<1x1x1x64xf32> to vector<1x64xf32>
    %c1_i32_116 = arith.constant 1 : i32
    %189 = tpu.dynamic_rotate %188 by %c1_i32_116 dim 1 : vector<1x64xf32>, i32 -> vector<1x64xf32>
    %190 = arith.mulf %189, %17 : vector<1x64xf32>
    %191 = arith.addf %188, %190 : vector<1x64xf32>
    %c63_i32_117 = arith.constant 63 : i32
    %192 = tpu.dynamic_rotate %188 by %c63_i32_117 dim 1 : vector<1x64xf32>, i32 -> vector<1x64xf32>
    %193 = arith.mulf %192, %18 : vector<1x64xf32>
    %194 = arith.addf %191, %193 : vector<1x64xf32>
    %c8_i32_118 = arith.constant 8 : i32
    %195 = tpu.dynamic_rotate %194 by %c8_i32_118 dim 1 : vector<1x64xf32>, i32 -> vector<1x64xf32>
    %196 = arith.mulf %195, %19 : vector<1x64xf32>
    %197 = arith.addf %194, %196 : vector<1x64xf32>
    %c56_i32_119 = arith.constant 56 : i32
    %198 = tpu.dynamic_rotate %194 by %c56_i32_119 dim 1 : vector<1x64xf32>, i32 -> vector<1x64xf32>
    %199 = arith.mulf %198, %20 : vector<1x64xf32>
    %200 = arith.addf %197, %199 : vector<1x64xf32>
    %201 = vector.broadcast %3 : f32 to vector<1x64xf32>
    %202 = arith.mulf %200, %201 : vector<1x64xf32>
    %c17_120 = arith.constant 17 : index
    %c0_121 = arith.constant 0 : index
    %203 = vector.load %arg8[%c17_120, %c0_121] : memref<18x64xf32, #tpu.memory_space<vmem>>, vector<1x64xf32>
    tpu.vector_store %arg8[%c17_120, %c0_121], %202 {strides = array<i32>} : memref<18x64xf32, #tpu.memory_space<vmem>>, vector<1x64xf32>,
    %c0_122 = arith.constant 0 : index
    %c0_123 = arith.constant 0 : index
    %204 = vector.load %arg8[%c0_122, %c0_123] : memref<18x64xf32, #tpu.memory_space<vmem>>, vector<16x64xf32>
    %c1_124 = arith.constant 1 : index
    %c0_125 = arith.constant 0 : index
    %205 = vector.load %arg8[%c1_124, %c0_125] : memref<18x64xf32, #tpu.memory_space<vmem>>, vector<16x64xf32>
    %206 = arith.addf %204, %205 : vector<16x64xf32>
    %c2_126 = arith.constant 2 : index
    %c0_127 = arith.constant 0 : index
    %207 = vector.load %arg8[%c2_126, %c0_127] : memref<18x64xf32, #tpu.memory_space<vmem>>, vector<16x64xf32>
    %208 = arith.addf %206, %207 : vector<16x64xf32>
    %209 = arith.mulf %12, %152 : vector<16x64xf32>
    %210 = arith.subf %208, %152 : vector<16x64xf32>
    %211 = arith.mulf %16, %210 : vector<16x64xf32>
    %212 = arith.addf %209, %211 : vector<16x64xf32>
    %c0_128 = arith.constant 0 : index
    %c2_129 = arith.constant 2 : index
    %c0_130 = arith.constant 0 : index
    %c0_131 = arith.constant 0 : index
    %213 = vector.load %arg7[%c0_128, %c2_129, %c0_130, %c0_131] : memref<1x3x16x64xf32, #tpu.memory_space<vmem>>, vector<1x1x16x64xf32>
    %214 = vector.shape_cast %213 : vector<1x1x16x64xf32> to vector<16x64xf32>
    %215 = vector.shape_cast %212 : vector<16x64xf32> to vector<1x1x16x64xf32>
    tpu.vector_store %arg7[%c0_128, %c2_129, %c0_130, %c0_131], %215 {strides = array<i32>} : memref<1x3x16x64xf32, #tpu.memory_space<vmem>>, vector<1x1x16x64xf32>,
    return
  }
  func.func @transform_0(%arg0: i32, %arg1: i32) -> (i32, i32) {
    %c0_i32 = arith.constant 0 : i32
    %c0_i32_0 = arith.constant 0 : i32
    %c0_i32_1 = arith.constant 0 : i32
    return %c0_i32, %c0_i32_0 : i32, i32
  }
  func.func @transform_1(%arg0: i32, %arg1: i32) -> (i32, i32, i32, i32) {
    %c0_i32 = arith.constant 0 : i32
    %c0_i32_0 = arith.constant 0 : i32
    %c0_i32_1 = arith.constant 0 : i32
    return %arg0, %arg1, %c0_i32, %c0_i32_0 : i32, i32, i32, i32
  }
  func.func @transform_2(%arg0: i32, %arg1: i32) -> (i32, i32, i32, i32) {
    %c0_i32 = arith.constant 0 : i32
    %c0_i32_0 = arith.constant 0 : i32
    %c0_i32_1 = arith.constant 0 : i32
    return %arg0, %arg1, %c0_i32, %c0_i32_0 : i32, i32, i32, i32
  }
  func.func @transform_3(%arg0: i32, %arg1: i32) -> (i32, i32, i32, i32) {
    %c0_i32 = arith.constant 0 : i32
    %c0_i32_0 = arith.constant 0 : i32
    %c0_i32_1 = arith.constant 0 : i32
    return %arg0, %c0_i32, %arg1, %c0_i32_0 : i32, i32, i32, i32
  }
  func.func @transform_4(%arg0: i32, %arg1: i32) -> (i32, i32, i32, i32) {
    %c0_i32 = arith.constant 0 : i32
    %c0_i32_0 = arith.constant 0 : i32
    %c0_i32_1 = arith.constant 0 : i32
    return %arg0, %c0_i32, %arg1, %c0_i32_0 : i32, i32, i32, i32
  }
  func.func @transform_5(%arg0: i32, %arg1: i32) -> (i32, i32, i32, i32) {
    %c0_i32 = arith.constant 0 : i32
    %c0_i32_0 = arith.constant 0 : i32
    %c0_i32_1 = arith.constant 0 : i32
    return %arg0, %c0_i32, %arg1, %c0_i32_0 : i32, i32, i32, i32
  }
}

</mosaic_0001>

<bundles_post_ra>
// kernel: correction_forward.1
= control target key start
LH: loop header
LB: loop body
LE: loop exit
PB: predicated region body
PF: predicated region fallthrough
CT: control target
= control target key end

     0   :  { %s1375_s18 = smov 0   ;;  %s1377_s19 = smov 0   ;;  %s1954_s0 = inlined_call_operand.vmem [shape: f32[4,64], index: 0, kind: input, shape index: {}]   ;;  %s1955_s1 = inlined_call_operand.vmem [shape: f32[2,2,3,64], index: 1, kind: input, shape index: {}]   ;;  %s1956_s2 = inlined_call_operand.vmem [shape: f32[2,2,3,64], index: 2, kind: input, shape index: {}]   ;;  %s1957_s3 = inlined_call_operand.vmem [shape: f32[2,3,32,64], index: 3, kind: input, shape index: {}]   ;;  %s1958_s4 = inlined_call_operand.vmem [shape: f32[2,1,32,64], index: 4, kind: input, shape index: {}]   ;;  %s1959_s5 = inlined_call_operand.vmem [shape: f32[2,3,32,64], index: 5, kind: output, shape index: {}]  }
   0x1   :  { %s1379_s20 = smov 0   ;;  %s1381_s21 = smov 0  }
   0x2   :  { %s1383_s22 = smov 0   ;;  %s1385_s23 = smov 0  }
   0x3   :  { %s1387_s24 = smov 0  }
   0x4 LB: > { %s24_s25 = sadd.s32 1, %s1326_s22  ;;  %s27_s26 = sadd.s32 1, %s1330_s23  ;;  %s1334_s24 = sphi %s1387_s24, %s15_s24   ;;  %s1330_s23 = sphi %s1385_s23, %s1970_s23   ;;  %s1326_s22 = sphi %s1383_s22, %s1969_s22   ;;  %s1322_s21 = sphi %s1381_s21, %s1968_s21   ;;  %s1318_s20 = sphi %s1379_s20, %s1967_s20   ;;  %s1314_s19 = sphi %s1377_s19, %s1966_s19   ;;  %s1310_s18 = sphi %s1375_s18, %s1965_s18  }
   0x5   : > { %p25_p0 = scmp.ge.s32.totalorder %s24_s25, 2  ;;  %s1177_s27 = sadd.s32 4294967295, %s1334_s24  }
   0x6   : > { %p120_p1 = scmp.ne.s32.totalorder %s1314_s19, %s1310_s18  ;;  %p121_p2 = scmp.eq.s32.totalorder %s1334_s24, 0 }
   0x7   : > { %s1972_s25 = smov (%p25_p0, %s24_s25), 0  ;;  %s1974_s26 = smov (!%p25_p0, %s27_s26), %s1330_s23 }
   0x8   : > { %p29_p3 = scmp.ge.s32.totalorder %s1974_s26, 2  ;;  %p180_p4 = scmp.eq.s32.totalorder %s1177_s27, 3 }
   0x9   : > { %s109_s28 = ssub.s32 %s1326_s22, %s1972_s25  ;;  %p122_p5 = por %p121_p2, %p120_p1 }
   0xa   : > { %s1976_s26 = smov (%p29_p3, %s1974_s26), 0  ;;  %p1423_p6 = por %p180_p4, %p120_p1 }
   0xb   : > { %s108_s30 = ssub.s32 %s1330_s23, %s1976_s26  ;;  %s113_s7 = sadd.s32 1, %s1314_s19 }
   0xc   : > { %s110_s6 = sor.u32 %s109_s28, %s108_s30  ;;  %p1180_p8 = scmp.ge.s32.totalorder %s1334_s24, 4 }
   0xd   : > { %p111_p7 = scmp.eq.s32.totalorder %s110_s6, 0 }
   0xe   : > { %205 = sbr.rel (%p1180_p8) target bundleno = 33 (0x21), region = 20 }
   0xf   : > { %s1431_s8 = scalar_select %p111_p7, %s1314_s19, %s113_s7  }
  0x13   : > { %230 = sbr.rel (!%p122_p5) target bundleno = 33 (0x21), region = 32  ;;  %s232_s9 = sand.u32 (%p122_p5), 1, %s1314_s19  }
  0x14   : > { %s1203_s10 = smul.u32 (%p122_p5), 48, %s232_s9  ;;  %s1181_s11 = sshll.u32 (%p122_p5), %s1326_s22, 1 }
  0x15   : > { %s1204_s12 = smul.u32 (%p122_p5), 12, %s1330_s23 }
  0x16   : > { %s234_s27 = scalar_lea.vmem (%p122_p5), [#allocation3], %s1203_s10 }
  0x17   : > { %s237_s13 = sadd.s32 (%p122_p5), %s1204_s12, %s1181_s11 }
  0x18   : > { %s1182_s14 = sshll.u32 %s237_s13, 3 }
  0x19   : > { %s239_s17 = scalar_lea.vmem %s1957_s3, %s1182_s14 }
  0x1a   : > { %v278_v0 = vld [vmem:[%s239_s17] sm:$0xff]  ;;  %v280_v1 = vld [vmem:[%s239_s17 + $0x8] sm:$0xff] }
  0x1b   : > { %v282_v2 = vld [vmem:[%s239_s17 + $0x20] sm:$0xff]  ;;  %279 = vst [vmem:[%s234_s27] sm:$0xff] %v278_v0  ;;  %v284_v3 = vld [vmem:[%s239_s17 + $0x28] sm:$0xff] }
  0x1c   : > { %281 = vst [vmem:[%s234_s27 + $0x8] sm:$0xff] %v280_v1  ;;  %v286_v4 = vld [vmem:[%s239_s17 + $0x40] sm:$0xff]  ;;  %v288_v5 = vld [vmem:[%s239_s17 + $0x48] sm:$0xff] }
  0x1d   : > { %283 = vst [vmem:[%s234_s27 + $0x10] sm:$0xff] %v282_v2 }
  0x1e   : > { %285 = vst [vmem:[%s234_s27 + $0x18] sm:$0xff] %v284_v3 }
  0x1f   : > { %287 = vst [vmem:[%s234_s27 + $0x20] sm:$0xff] %v286_v4 }
  0x20   : > { %289 = vst [vmem:[%s234_s27 + $0x28] sm:$0xff] %v288_v5 }
  0x21 PF: > { %p1183_p9 = scmp.ge.s32.totalorder %s1334_s24, 1  ;;  %p307_p10 = scmp.lt.s32.totalorder %s1334_s24, 5 }
  0x23   : > { %p308_p11 = pnand %p1183_p9, %p307_p10 }
  0x24   : > { %s1961_s6 = smov (!%p308_p11), 1   ;;  %s1960_s10 = smov (!%p308_p11), 63  }
  0x25   : > { %311 = sbr.rel (%p308_p11) target bundleno = 874 (0x36a), region = 74  ;;  %p365_p12 = scmp.lt.s32.totalorder (!%p308_p11), %s1322_s21, 1 }
  0x26   : > { %p367_p13 = scmp.lt.s32.totalorder (!%p308_p11), %s1318_s20, 1  ;;  %s1338_s27 = smov (!%p308_p11), 56  }
  0x27   : > { %s314_s9 = sand.u32 (!%p308_p11), 1, %s1310_s18   ;;  %s1340_s14 = smov (!%p308_p11), 8  }
  0x28   : > { %s1344_s30 = smov (!%p308_p11), 120   ;;  %p393_p1 = scmp.eq.s32.totalorder (!%p308_p11), %s1318_s20, 0 }
  0x29   : > { %p395_p2 = scmp.eq.s32.totalorder (!%p308_p11), %s1318_s20, 1 }
  0x2a   : > { %v414_v6 = vld [vmem:[%s1954_s0 + $0x1] sm:$0x1]  ;;  %v413_v7 = vld [vmem:[%s1954_s0] sm:$0x1]  ;;  %s1453_s11 = scalar_select %p365_p12, %s1322_s21, 1  ;;  %vm420_vm0 = vcmask 1048064  }
  0x2b   : > { %438 = vrot.lane.b32.xlu2 %v414_v6, %s1961_s6  ;;  %428 = vrot.lane.b32.xlu1 %v413_v7, %s1960_s10  ;;  %s368_s12 = scalar_select %p367_p13, %s1318_s20, 1  ;;  %v415_v8 = vld [vmem:[%s1954_s0 + $0x2] sm:$0x1]  ;;  %v1272_v20 = vld [vmem:[%s1954_s0 + $0x1] ss:$0 sm:$0xff]  ;;  %vm569_vm1 = vcmask 523264  }
  0x2c   : > { %s1184_s15 = sshll.u32 %s1453_s11, 1  ;;  %s1339_s10 = smov 64   ;;  %v1273_v22 = vld [vmem:[%s1954_s0] ss:$0 sm:$0xff]  ;;  %v416_v23 = vld [vmem:[%s1954_s0 + $0x3] sm:$0x1] }
  0x2d   : > { %s370_s16 = sadd.s32 %s1184_s15, %s368_s12  ;;  %s1469_s6 = smul.u32 48, %s314_s9  ;;  %vm475_vm2 = vcmask 516096  }
  0x2e   : > { %s1185_s17 = sshll.u32 %s370_s16, 2  ;;  %s1189_s9 = sshll.u32 %s1453_s11, 2 }
  0x2f   : > { %s372_s7 = scalar_lea.vmem %s1955_s1, %s1185_s17  ;;  %s380_s12 = scalar_lea.vmem %s1956_s2, %s1185_s17 }
  0x30   : > { %v1465_v9 = vld [vmem:[%s372_s7] sm:$0x1]  ;;  %s316_s15 = scalar_lea.vmem [#allocation3], %s1469_s6  ;;  %v1487_v13 = vld [vmem:[%s380_s12 + $0x1] sm:$0x1]  ;;  %s1963_s17 = smov 1  }
  0x31   : > { %421 = vrot.lane.b32.xlu0 %v1465_v9, %s1339_s10  ;;  %v1475_v10 = vld [vmem:[%s316_s15] sm:$0xff]  ;;  %v1477_v11 = vld [vmem:[%s316_s15 + $0x8] sm:$0xff]  ;;  %v1489_v14 = vld [vmem:[%s316_s15 + $0x10] sm:$0xff]  ;;  %s394_s11 = scalar_select %p393_p1, 0.0, 1.0 }
  0x32   : > { %v1481_v12 = vld [vmem:[%s380_s12] sm:$0x1]  ;;  %v1493_v15 = vld [vmem:[%s372_s7 + $0x1] sm:$0x1]  ;;  %v1499_v16 = vld [vmem:[%s372_s7 + $0x2] sm:$0x1] }
  0x33   : > { %454 = vrot.lane.b32.xlu2 %v415_v8, %s1338_s27  ;;  %477 = vrot.lane.b32.xlu1 %v1475_v10, %s1339_s10  ;;  %v1501_v17 = vld [vmem:[%s316_s15 + $0x20] sm:$0xff]  ;;  %v1505_v18 = vld [vmem:[%s316_s15 + $0x18] sm:$0xff]  ;;  %s1964_s7 = smov 63  }
  0x34   : > { %v1511_v19 = vld [vmem:[%s380_s12 + $0x2] sm:$0x1]  ;;  %s1341_s12 = smov 65  }
  0x35   : > { %v1518_v21 = vld [vmem:[%s316_s15 + $0x28] sm:$0xff]  ;;  %s1342_s15 = smov 127  }
  0x36   : > { %s396_s16 = scalar_select %p395_p2, 0.0, 1.0 }
  0x39   : > { %573 = vrot.lane.b32.xlu0 %v1481_v12, %s1339_s10 }
  0x3b   : > { %480 = vrot.lane.b32.xlu2 %v1477_v11, %s1339_s10  ;;  %749 = vrot.lane.b32.xlu1 %v1487_v13, %s1339_s10 }
  0x41   : > { %636 = vrot.lane.b32.xlu0 %v1493_v15, %s1339_s10 }
  0x43   : > { %674 = vrot.lane.b32.xlu2 %v1489_v14, %s1339_s10  ;;  %812 = vrot.lane.b32.xlu1 %v1499_v16, %s1339_s10 }
  0x49   : > { %677 = vrot.lane.b32.xlu0 %v1505_v18, %s1339_s10 }
  0x4b   : > { %850 = vrot.lane.b32.xlu2 %v1501_v17, %s1339_s10  ;;  %925 = vrot.lane.b32.xlu1 %v1511_v19, %s1339_s10 }
  0x51   : > { %853 = vrot.lane.b32.xlu0 %v1518_v21, %s1339_s10 }
  0x53   : > { %508 = vrot.lane.b32.xlu2 %v1272_v20, %s1963_s17  ;;  %491 = vrot.lane.b32.xlu1 %v1273_v22, %s1964_s7 }
  0x59   : > { %464 = vrot.lane.b32.xlu0 %v416_v23, %s1340_s14 }
  0x85   : > { %v1531_v24 = vpop.permute.xlu2 %438 }
  0x8d   : > { %v1533_v25 = vpop.permute.xlu2 %454 }
  0x95   : > { %v481_v26 = vpop.permute.xlu2 %480 }
  0x96   : > { %v482_v27 = vsel %vm420_vm0, %v481_v26, %v1477_v11 }
  0x97   : > { %485 = vrot.lane.b32.xlu0 %v482_v27, %s1339_s10 }
  0x9d   : > { %v1538_v28 = vpop.permute.xlu1 %428  ;;  %v675_v33 = vpop.permute.xlu2 %674 }
  0x9e   : > { %v676_v35 = vsel %vm420_vm0, %v675_v33, %v1489_v14 }
  0xa3   : > { %v422_v29 = vpop.permute.xlu0 %421 }
  0xa4   : > { %v423_v49 = vsel %vm420_vm0, %v422_v29, %v1465_v9 }
  0xa5   : > { %v478_v30 = vpop.permute.xlu1 %477  ;;  %v851_v39 = vpop.permute.xlu2 %850 }
  0xa6   : > { %v479_v31 = vsel %vm420_vm0, %v478_v30, %v1475_v10  ;;  %v852_v40 = vsel %vm420_vm0, %v851_v39, %v1501_v17 }
  0xa7   : > { %483 = vrot.lane.b32.xlu2 %v479_v31, %s1339_s10 }
  0xab   : > { %v574_v32 = vpop.permute.xlu0 %573 }
  0xac   : > { %v575_v34 = vsel %vm420_vm0, %v574_v32, %v1481_v12 }
  0xad   : > { %576 = vrot.lane.b32.xlu1 %v575_v34, %s1339_s10  ;;  %v750_v36 = vpop.permute.xlu1 %749  ;;  %v1573_v51 = vpop.permute.xlu2 %508 }
  0xae   : > { %v751_v37 = vsel %vm420_vm0, %v750_v36, %v1487_v13 }
  0xaf   : > { %680 = vrot.lane.b32.xlu2 %v676_v35, %s1339_s10 }
  0xb3   : > { %v637_v38 = vpop.permute.xlu0 %636 }
  0xb4   : > { %v638_v50 = vsel %vm420_vm0, %v637_v38, %v1493_v15 }
  0xb5   : > { %752 = vrot.lane.b32.xlu1 %v751_v37, %s1339_s10  ;;  %v813_v41 = vpop.permute.xlu1 %812 }
  0xb6   : > { %v814_v42 = vsel %vm420_vm0, %v813_v41, %v1499_v16 }
  0xb7   : > { %856 = vrot.lane.b32.xlu2 %v852_v40, %s1339_s10 }
  0xbb   : > { %v678_v43 = vpop.permute.xlu0 %677 }
  0xbc   : > { %v679_v44 = vsel %vm420_vm0, %v678_v43, %v1505_v18 }
  0xbd   : > { %682 = vrot.lane.b32.xlu0 %v679_v44, %s1339_s10  ;;  %815 = vrot.lane.b32.xlu1 %v814_v42, %s1339_s10  ;;  %v926_v45 = vpop.permute.xlu1 %925 }
  0xbe   : > { %v927_v46 = vsel %vm420_vm0, %v926_v45, %v1511_v19 }
  0xc3   : > { %v854_v47 = vpop.permute.xlu0 %853 }
  0xc4   : > { %v855_v48 = vsel %vm420_vm0, %v854_v47, %v1518_v21 }
  0xc5   : > { %858 = vrot.lane.b32.xlu0 %v855_v48, %s1339_s10  ;;  %928 = vrot.lane.b32.xlu1 %v927_v46, %s1339_s10  ;;  %v492_v53 = vpop.permute.xlu1 %491 }
  0xcb   : > { %v1575_v52 = vpop.permute.xlu0 %464 }
  0xcd   : > { %424 = vrot.lane.b32.xlu0 %v423_v49, %s1339_s10 }
  0xd5   : > { %639 = vrot.lane.b32.xlu0 %v638_v50, %s1339_s10 }
 0x101   : > { %v484_v54 = vpop.permute.xlu2 %483 }
 0x102   : > { %v487_v55 = vsel %vm420_vm0, %v484_v54, %v1475_v10 }
 0x103   : > { %v494_v56 = vmul.f32 %v492_v53, %v487_v55  ;;  %v511_v60 = vmul.f32 %v1573_v51, %v487_v55 }
 0x105   : > { %498 = vrot.lane.b32.xlu1 %v494_v56, %s1341_s12 }
 0x109   : > { %v486_v57 = vpop.permute.xlu0 %485  ;;  %v681_v61 = vpop.permute.xlu2 %680 }
 0x10a   : > { %v488_v58 = vsel %vm420_vm0, %v486_v57, %v1477_v11  ;;  %v684_v62 = vsel %vm420_vm0, %v681_v61, %v1489_v14 }
 0x10b   : > { %v495_v59 = vmul.f32 %v492_v53, %v488_v58  ;;  %v512_v63 = vmul.f32 %v1573_v51, %v488_v58  ;;  %v686_v0 = vmul.f32 %v684_v62, %v492_v53  ;;  %v698_v1 = vmul.f32 %v684_v62, %v1573_v51 }
 0x10d   : > { %500 = vrot.lane.b32.xlu2 %v495_v59, %s1341_s12  ;;  %515 = vrot.lane.b32.xlu1 %v511_v60, %s1342_s15 }
 0x10e   : > { %690 = vrot.lane.b32.xlu0 %v686_v0, %s1341_s12 }
 0x111   : > { %v857_v27 = vpop.permute.xlu2 %856 }
 0x112   : > { %v860_v30 = vsel %vm420_vm0, %v857_v27, %v1501_v17  ;;  %v1275_v27 = vld [vmem:[%s1954_s0 + $0x3] ss:$0 sm:$0xff] }
 0x113   : > { %v862_v33 = vmul.f32 %v860_v30, %v492_v53  ;;  %v874_v48 = vmul.f32 %v860_v30, %v1573_v51 }
 0x115   : > { %517 = vrot.lane.b32.xlu2 %v512_v63, %s1342_s15 }
 0x116   : > { %702 = vrot.lane.b32.xlu0 %v698_v1, %s1342_s15 }
 0x11f   : > { %v577_v2 = vpop.permute.xlu1 %576 }
 0x120   : > { %v578_v3 = vsel %vm420_vm0, %v577_v2, %v1481_v12 }
 0x121   : > { %v579_v4 = vmul.f32 %v578_v3, %v1538_v28  ;;  %v585_v5 = vmul.f32 %v578_v3, %v1531_v24 }
 0x123   : > { %581 = vrot.lane.b32.xlu0 %v579_v4, %s1341_s12 }
 0x127   : > { %v753_v31 = vpop.permute.xlu1 %752 }
 0x128   : > { %v754_v41 = vsel %vm420_vm0, %v753_v31, %v1487_v13 }
 0x129   : > { %v755_v43 = vmul.f32 %v754_v41, %v1538_v28  ;;  %v761_v49 = vmul.f32 %v754_v41, %v1531_v24 }
 0x12b   : > { %587 = vrot.lane.b32.xlu0 %v585_v5, %s1342_s15 }
 0x12f   : > { %v683_v6 = vpop.permute.xlu0 %682  ;;  %v816_v40 = vpop.permute.xlu1 %815 }
 0x130   : > { %v685_v7 = vsel %vm420_vm0, %v683_v6, %v1505_v18  ;;  %v817_v42 = vsel %vm420_vm0, %v816_v40, %v1499_v16 }
 0x131   : > { %v687_v8 = vmul.f32 %v685_v7, %v492_v53  ;;  %v699_v23 = vmul.f32 %v685_v7, %v1573_v51  ;;  %v824_v45 = vmul.f32 %v817_v42, %v1531_v24 }
 0x133   : > { %692 = vrot.lane.b32.xlu1 %v687_v8, %s1341_s12 }
 0x137   : > { %v859_v20 = vpop.permute.xlu0 %858  ;;  %v929_v46 = vpop.permute.xlu1 %928 }
 0x138   : > { %v861_v22 = vsel %vm420_vm0, %v859_v20, %v1518_v21  ;;  %v930_v47 = vsel %vm420_vm0, %v929_v46, %v1511_v19 }
 0x139   : > { %v863_v26 = vmul.f32 %v861_v22, %v492_v53  ;;  %v875_v37 = vmul.f32 %v861_v22, %v1573_v51  ;;  %v931_v50 = vmul.f32 %v930_v47, %v1538_v28  ;;  %v818_v53 = vmul.f32 %v817_v42, %v1538_v28 }
 0x13a   : > { %v937_v54 = vmul.f32 %v930_v47, %v1531_v24 }
 0x13b   : > { %868 = vrot.lane.b32.xlu2 %v863_v26, %s1341_s12  ;;  %704 = vrot.lane.b32.xlu1 %v699_v23, %s1342_s15 }
 0x13f   : > { %v425_v29 = vpop.permute.xlu0 %424 }
 0x140   : > { %v426_v32 = vsel %vm420_vm0, %v425_v29, %v1465_v9 }
 0x141   : > { %v441_v34 = vmul.f32 %v1531_v24, %v426_v32  ;;  %v431_v38 = vmul.f32 %v1538_v28, %v426_v32 }
 0x143   : > { %443 = vrot.lane.b32.xlu2 %v441_v34, %s1342_s15  ;;  %866 = vrot.lane.b32.xlu1 %v862_v33, %s1341_s12 }
 0x147   : > { %v640_v35 = vpop.permute.xlu0 %639 }
 0x148   : > { %v641_v36 = vsel %vm420_vm0, %v640_v35, %v1493_v15 }
 0x149   : > { %v642_v39 = vmul.f32 %v641_v36, %v1538_v28  ;;  %v648_v44 = vmul.f32 %v641_v36, %v1531_v24 }
 0x14b   : > { %880 = vrot.lane.b32.xlu2 %v875_v37, %s1342_s15  ;;  %433 = vrot.lane.b32.xlu1 %v431_v38, %s1341_s12 }
 0x14c   : > { %644 = vrot.lane.b32.xlu0 %v642_v39, %s1341_s12 }
 0x153   : > { %650 = vrot.lane.b32.xlu2 %v648_v44, %s1342_s15  ;;  %757 = vrot.lane.b32.xlu1 %v755_v43, %s1341_s12 }
 0x154   : > { %826 = vrot.lane.b32.xlu0 %v824_v45, %s1342_s15 }
 0x15b   : > { %763 = vrot.lane.b32.xlu2 %v761_v49, %s1342_s15  ;;  %878 = vrot.lane.b32.xlu1 %v874_v48, %s1342_s15 }
 0x15c   : > { %933 = vrot.lane.b32.xlu0 %v931_v50, %s1341_s12 }
 0x163   : > { %820 = vrot.lane.b32.xlu2 %v818_v53, %s1341_s12 }
 0x164   : > { %939 = vrot.lane.b32.xlu0 %v937_v54, %s1342_s15 }
 0x167   : > { %v501_v55 = vpop.permute.xlu2 %500 }
 0x168   : > { %v505_v51 = vadd.f32 %v501_v55, %v1477_v11 }
 0x16f   : > { %v518_v56 = vpop.permute.xlu2 %517 }
 0x170   : > { %v1644_v57 = vadd.f32 %v518_v56, %v505_v51 }
 0x172   : > { %526 = vrot.lane.b32.xlu0 %v1644_v57, %s1339_s10 }
 0x177   : > { %v499_v58 = vpop.permute.xlu1 %498 }
 0x178   : > { %v504_v59 = vadd.f32 %v499_v58, %v1475_v10 }
 0x17f   : > { %v516_v28 = vpop.permute.xlu1 %515 }
 0x180   : > { %v691_v60 = vpop.permute.xlu0 %690  ;;  %v1649_v61 = vadd.f32 %v516_v28, %v504_v59 }
 0x181   : > { %v696_v24 = vadd.f32 %v1489_v14, %v691_v60 }
 0x182   : > { %523 = vrot.lane.b32.xlu2 %v1649_v61, %s1339_s10 }
 0x188   : > { %v703_v62 = vpop.permute.xlu0 %702 }
 0x189   : > { %v1654_v63 = vadd.f32 %v703_v62, %v696_v24 }
 0x18b   : > { %710 = vrot.lane.b32.xlu0 %v1654_v63, %s1339_s10 }
 0x195   : > { %v869_v0 = vpop.permute.xlu2 %868  ;;  %v582_v3 = vpop.permute.xlu0 %581 }
 0x196   : > { %v873_v8 = vadd.f32 %v1518_v21, %v869_v0  ;;  %v584_v34 = vadd.f32 %v582_v3, %v1481_v12 }
 0x19d   : > { %v444_v1 = vpop.permute.xlu2 %443  ;;  %v588_v22 = vpop.permute.xlu0 %587 }
 0x19e   : > { %v1678_v36 = vadd.f32 %v588_v22, %v584_v34 }
 0x1a5   : > { %v693_v2 = vpop.permute.xlu1 %692  ;;  %v881_v5 = vpop.permute.xlu2 %880 }
 0x1a6   : > { %v697_v4 = vadd.f32 %v1505_v18, %v693_v2  ;;  %v1664_v23 = vadd.f32 %v881_v5, %v873_v8 }
 0x1ad   : > { %v705_v6 = vpop.permute.xlu1 %704  ;;  %v651_v26 = vpop.permute.xlu2 %650 }
 0x1ae   : > { %v1659_v7 = vadd.f32 %v705_v6, %v697_v4 }
 0x1b0   : > { %713 = vrot.lane.b32.xlu1 %v1659_v7, %s1339_s10 }
 0x1b5   : > { %v867_v20 = vpop.permute.xlu1 %866  ;;  %v764_v33 = vpop.permute.xlu2 %763 }
 0x1b6   : > { %v872_v41 = vadd.f32 %v1501_v17, %v867_v20 }
 0x1b8   : > { %889 = vrot.lane.b32.xlu1 %v1664_v23, %s1339_s10 }
 0x1bd   : > { %v434_v29 = vpop.permute.xlu1 %433  ;;  %v821_v40 = vpop.permute.xlu2 %820 }
 0x1be   : > { %v645_v30 = vpop.permute.xlu0 %644  ;;  %v436_v31 = vadd.f32 %v434_v29, %v1465_v9  ;;  %v823_v43 = vadd.f32 %v821_v40, %v1499_v16 }
 0x1bf   : > { %v647_v9 = vadd.f32 %v645_v30, %v1493_v15  ;;  %v1274_v15 = vld [vmem:[%s1954_s0 + $0x2] ss:$0 sm:$0xff] }
 0x1c0   : > { %v1672_v32 = vadd.f32 %v444_v1, %v436_v31  ;;  %554 = vrot.lane.b32.xlu1 %v1275_v27, %s1340_s14 }
 0x1c1   : > { %v1689_v42 = vadd.f32 %v651_v26, %v647_v9 }
 0x1c2   : > { %447 = vrot.lane.b32.xlu0 %v1672_v32, %s1339_s10 }
 0x1c5   : > { %v758_v35 = vpop.permute.xlu1 %757 }
 0x1c6   : > { %v827_v37 = vpop.permute.xlu0 %826  ;;  %v760_v38 = vadd.f32 %v758_v35, %v1487_v13 }
 0x1c7   : > { %v1694_v45 = vadd.f32 %v827_v37, %v823_v43 }
 0x1c8   : > { %v1681_v39 = vadd.f32 %v764_v33, %v760_v38  ;;  %591 = vrot.lane.b32.xlu1 %v1678_v36, %s1339_s10 }
 0x1ca   : > { %767 = vrot.lane.b32.xlu2 %v1681_v39, %s1339_s10 }
 0x1cd   : > { %v879_v12 = vpop.permute.xlu1 %878 }
 0x1ce   : > { %v934_v44 = vpop.permute.xlu0 %933  ;;  %v1692_v13 = vadd.f32 %v879_v12, %v872_v41 }
 0x1cf   : > { %v936_v16 = vadd.f32 %v934_v44, %v1511_v19 }
 0x1d0   : > { %654 = vrot.lane.b32.xlu1 %v1689_v42, %s1339_s10  ;;  %886 = vrot.lane.b32.xlu0 %v1692_v13, %s1339_s10 }
 0x1d2   : > { %830 = vrot.lane.b32.xlu2 %v1694_v45, %s1339_s10 }
 0x1d6   : > { %v940_v46 = vpop.permute.xlu0 %939 }
 0x1d7   : > { %v1706_v47 = vadd.f32 %v940_v46, %v936_v16 }
 0x1d8   : > { %537 = vrot.lane.b32.xlu0 %v1274_v15, %s1338_s27  ;;  %s1343_s27 = smov 72  }
 0x1da   : > { %943 = vrot.lane.b32.xlu2 %v1706_v47, %s1339_s10 }
 0x1dc   : > { %v524_v48 = vpop.permute.xlu2 %523 }
 0x1dd   : > { %v525_v49 = vsel %vm420_vm0, %v524_v48, %v1649_v61 }
 0x1de   : > { %529 = vrot.lane.b32.xlu1 %v525_v49, %s1339_s10 }
 0x1e4   : > { %v527_v50 = vpop.permute.xlu0 %526 }
 0x1e5   : > { %v528_v53 = vsel %vm420_vm0, %v527_v50, %v1644_v57 }
 0x1e6   : > { %531 = vrot.lane.b32.xlu2 %v528_v53, %s1339_s10 }
 0x1fd   : > { %v711_v19 = vpop.permute.xlu0 %710 }
 0x1fe   : > { %v712_v54 = vsel %vm420_vm0, %v711_v19, %v1654_v63 }
 0x1ff   : > { %716 = vrot.lane.b32.xlu1 %v712_v54, %s1339_s10 }
 0x222   : > { %v714_v55 = vpop.permute.xlu1 %713 }
 0x223   : > { %v715_v51 = vsel %vm420_vm0, %v714_v55, %v1659_v7 }
 0x224   : > { %718 = vrot.lane.b32.xlu2 %v715_v51, %s1339_s10  ;;  %v768_v60 = vpop.permute.xlu2 %767 }
 0x225   : > { %v769_v3 = vsel %vm420_vm0, %v768_v60, %v1681_v39 }
 0x22a   : > { %v890_v56 = vpop.permute.xlu1 %889 }
 0x22b   : > { %v891_v58 = vsel %vm420_vm0, %v890_v56, %v1664_v23 }
 0x22c   : > { %894 = vrot.lane.b32.xlu2 %v891_v58, %s1339_s10  ;;  %v831_v5 = vpop.permute.xlu2 %830 }
 0x22d   : > { %v832_v8 = vsel %vm420_vm0, %v831_v5, %v1694_v45 }
 0x232   : > { %v1726_v59 = vpop.permute.xlu1 %554 }
 0x234   : > { %v448_v28 = vpop.permute.xlu0 %447  ;;  %v944_v20 = vpop.permute.xlu2 %943 }
 0x235   : > { %v449_v6 = vsel %vm420_vm0, %v448_v28, %v1672_v32  ;;  %v945_v29 = vsel %vm420_vm0, %v944_v20, %v1706_v47 }
 0x23a   : > { %v592_v24 = vpop.permute.xlu1 %591 }
 0x23b   : > { %v593_v62 = vsel %vm420_vm0, %v592_v24, %v1678_v36 }
 0x23c   : > { %594 = vrot.lane.b32.xlu0 %v593_v62, %s1339_s10 }
 0x240   : > { %v532_v31 = vpop.permute.xlu2 %531 }
 0x241   : > { %v534_v33 = vsel %vm420_vm0, %v532_v31, %v1644_v57 }
 0x242   : > { %v887_v0 = vpop.permute.xlu0 %886  ;;  %v655_v1 = vpop.permute.xlu1 %654  ;;  %v558_v37 = vmul.f32 %v1726_v59, %v534_v33 }
 0x243   : > { %v888_v2 = vsel %vm420_vm0, %v887_v0, %v1692_v13  ;;  %v656_v4 = vsel %vm420_vm0, %v655_v1, %v1689_v42 }
 0x244   : > { %892 = vrot.lane.b32.xlu1 %v888_v2, %s1339_s10  ;;  %770 = vrot.lane.b32.xlu0 %v769_v3, %s1339_s10 }
 0x245   : > { %657 = vrot.lane.b32.xlu2 %v656_v4, %s1339_s10 }
 0x24a   : > { %v1746_v26 = vpop.permute.xlu0 %537 }
 0x24b   : > { %v541_v34 = vmul.f32 %v1746_v26, %v534_v33 }
 0x24c   : > { %450 = vrot.lane.b32.xlu1 %v449_v6, %s1339_s10  ;;  %833 = vrot.lane.b32.xlu0 %v832_v8, %s1339_s10 }
 0x250   : > { %v530_v22 = vpop.permute.xlu1 %529 }
 0x251   : > { %v533_v27 = vsel %vm420_vm0, %v530_v22, %v1649_v61 }
 0x252   : > { %v540_v30 = vmul.f32 %v1746_v26, %v533_v27  ;;  %v557_v35 = vmul.f32 %v1726_v59, %v533_v27 }
 0x254   : > { %946 = vrot.lane.b32.xlu0 %v945_v29, %s1339_s10  ;;  %544 = vrot.lane.b32.xlu2 %v540_v30, %s1343_s27  ;;  %s1828_s10 = sshll.u32 %s1318_s20, 1  ;;  %s1879_s20 = scalar_lea.vmem [#allocation4], %s1469_s6 }
 0x255   : > { %p385_p0 = scmp.lt.s32.totalorder %s1828_s10, 3  ;;  %s1206_s6 = smul.u32 (%p1423_p6), 12, %s1322_s21 }
 0x257   : > { %s386_s7 = scalar_select %p385_p0, %s1828_s10, 3 }
 0x258   : > { %s993_s17 = sadd.s32 (%p1423_p6), %s1206_s6, %s1828_s10 }
 0x259   : > { %s388_s13 = sadd.s32 %s1189_s9, %s386_s7  ;;  %s1200_s28 = sshll.u32 (%p1423_p6), %s993_s17, 3 }
 0x25a   : > { %s1190_s14 = sshll.u32 %s388_s13, 3  ;;  %s995_s7 = scalar_lea.vmem (%p1423_p6), %s1959_s5, %s1200_s28 }
 0x25b   : > { %s390_s18 = scalar_lea.vmem %s1958_s4, %s1190_s14 }
 0x25c   : > { %546 = vrot.lane.b32.xlu0 %v541_v34, %s1343_s27  ;;  %561 = vrot.lane.b32.xlu2 %v557_v35, %s1344_s30 }
 0x264   : > { %563 = vrot.lane.b32.xlu0 %v558_v37, %s1344_s30 }
 0x271   : > { %v717_v38 = vpop.permute.xlu1 %716 }
 0x272   : > { %v720_v9 = vsel %vm420_vm0, %v717_v38, %v1654_v63 }
 0x273   : > { %v722_v40 = vmul.f32 %v720_v9, %v1746_v26  ;;  %v734_v41 = vmul.f32 %v720_v9, %v1726_v59 }
 0x275   : > { %726 = vrot.lane.b32.xlu1 %v722_v40, %s1343_s27 }
 0x27d   : > { %738 = vrot.lane.b32.xlu1 %v734_v41, %s1344_s30 }
 0x27e   : > { %v719_v12 = vpop.permute.xlu2 %718 }
 0x27f   : > { %v721_v43 = vsel %vm420_vm0, %v719_v12, %v1659_v7 }
 0x280   : > { %v723_v44 = vmul.f32 %v721_v43, %v1746_v26  ;;  %v735_v46 = vmul.f32 %v721_v43, %v1726_v59  ;;  %v398_v43 = vld [vmem:[%s390_s18 + $0x8] sm:$0xff] }
 0x282   : > { %728 = vrot.lane.b32.xlu2 %v723_v44, %s1343_s27 }
 0x286   : > { %v895_v15 = vpop.permute.xlu2 %894 }
 0x287   : > { %v897_v16 = vsel %vm420_vm0, %v895_v15, %v1664_v23  ;;  %v400_v15 = vmul.f32 -3.0, %v398_v43 }
 0x288   : > { %v899_v48 = vmul.f32 %v897_v16, %v1746_v26  ;;  %v911_v22 = vmul.f32 %v897_v16, %v1726_v59 }
 0x28a   : > { %904 = vrot.lane.b32.xlu0 %v899_v48, %s1343_s27  ;;  %740 = vrot.lane.b32.xlu2 %v735_v46, %s1344_s30 }
 0x29f   : > { %v658_v49 = vpop.permute.xlu2 %657 }
 0x2a0   : > { %v659_v50 = vsel %vm420_vm0, %v658_v49, %v1689_v42  ;;  %v403_v49 = vmul.f32 1.442695, %v400_v15 }
 0x2a1   : > { %v666_v53 = vmul.f32 %v659_v50, %v1575_v52  ;;  %v660_v5 = vmul.f32 %v659_v50, %v1533_v25 }
 0x2a3   : > { %668 = vrot.lane.b32.xlu0 %v666_v53, %s1344_s30 }
 0x2ae   : > { %v595_v19 = vpop.permute.xlu0 %594  ;;  %v545_v55 = vpop.permute.xlu2 %544 }
 0x2af   : > { %v596_v54 = vsel %vm420_vm0, %v595_v19, %v1678_v36  ;;  %v550_v60 = vadd.f32 %v545_v55, %v1649_v61  ;;  %v1841_v55 = vstv %s394_s11 }
 0x2b0   : > { %v597_v51 = vmul.f32 %v596_v54, %v1533_v25  ;;  %v603_v24 = vmul.f32 %v596_v54, %v1575_v52 }
 0x2b2   : > { %599 = vrot.lane.b32.xlu1 %v597_v51, %s1343_s27 }
 0x2b6   : > { %v771_v56 = vpop.permute.xlu0 %770  ;;  %v893_v58 = vpop.permute.xlu1 %892 }
 0x2b7   : > { %v772_v28 = vsel %vm420_vm0, %v771_v56, %v1681_v39  ;;  %v562_v62 = vpop.permute.xlu2 %561  ;;  %v896_v37 = vsel %vm420_vm0, %v893_v58, %v1692_v13 }
 0x2b8   : > { %v779_v0 = vmul.f32 %v772_v28, %v1575_v52  ;;  %v567_v1 = vadd.f32 %v562_v62, %v550_v60  ;;  %v773_v34 = vmul.f32 %v772_v28, %v1533_v25  ;;  %v898_v41 = vmul.f32 %v896_v37, %v1746_v26  ;;  %v397_v26 = vld [vmem:[%s390_s18] sm:$0xff] }
 0x2b9   : > { %v399_v12 = vmul.f32 -3.0, %v397_v26 }
 0x2ba   : > { %781 = vrot.lane.b32.xlu0 %v779_v0, %s1344_s30  ;;  %605 = vrot.lane.b32.xlu1 %v603_v24, %s1344_s30  ;;  %570 = vst.msk [vmem:[#allocation2 + $0x1] sm:$0xff] %vm569_vm1, %v567_v1  ;;  %v1848_v0 = vstv %s396_s16 }
 0x2bb   : > { %v401_v44 = vmul.f32 1.442695, %v399_v12 }
 0x2bd   : > { %1276 = vpow2.f32 %v401_v44 }
 0x2be   : > { %v834_v2 = vpop.permute.xlu0 %833  ;;  %v451_v3 = vpop.permute.xlu1 %450  ;;  %1278 = vpow2.f32 %v403_v49 }
 0x2bf   : > { %v835_v61 = vsel %vm420_vm0, %v834_v2, %v1694_v45  ;;  %v452_v4 = vsel %vm420_vm0, %v451_v3, %v1672_v32 }
 0x2c0   : > { %v836_v6 = vmul.f32 %v835_v61, %v1533_v25  ;;  %v457_v8 = vmul.f32 %v1533_v25, %v452_v4  ;;  %v842_v27 = vmul.f32 %v835_v61, %v1575_v52  ;;  %v467_v29 = vmul.f32 %v1575_v52, %v452_v4 }
 0x2c2   : > { %838 = vrot.lane.b32.xlu0 %v836_v6, %s1343_s27  ;;  %662 = vrot.lane.b32.xlu1 %v660_v5, %s1343_s27 }
 0x2c3   : > { %459 = vrot.lane.b32.xlu2 %v457_v8, %s1343_s27  ;;  %v1277_v54 = vpop.eup %1276 }
 0x2c4   : > { %v405_v58 = vmax.f32 %v1277_v54, 0.0  ;;  %v1279_v28 = vpop.eup %1278 }
 0x2c5   : > { %v406_v2 = vmax.f32 %v1279_v28, 0.0 }
 0x2c6   : > { %v947_v20 = vpop.permute.xlu0 %946  ;;  %v1846_v62 = vmin.f32 %v405_v58, 1.0 }
 0x2c7   : > { %v948_v30 = vsel %vm420_vm0, %v947_v20, %v1706_v47 }
 0x2c8   : > { %v949_v33 = vmul.f32 %v948_v30, %v1533_v25  ;;  %v955_v40 = vmul.f32 %v948_v30, %v1575_v52  ;;  %v910_v25 = vmul.f32 %v896_v37, %v1726_v59  ;;  %v409_v6 = vsub.f32 1.0, %v1846_v62 }
 0x2ca   : > { %916 = vrot.lane.b32.xlu0 %v911_v22, %s1344_s30  ;;  %844 = vrot.lane.b32.xlu1 %v842_v27, %s1344_s30  ;;  %v614_v22 = vld [vmem:[#allocation2 + $0x1] sm:$0xff] }
 0x2cb   : > { %469 = vrot.lane.b32.xlu2 %v467_v29, %s1344_s30 }
 0x2ce   : > { %v547_v31 = vpop.permute.xlu0 %546 }
 0x2cf   : > { %v551_v35 = vadd.f32 %v547_v31, %v1644_v57 }
 0x2d2   : > { %951 = vrot.lane.b32.xlu1 %v949_v33, %s1343_s27  ;;  %v1858_v33 = vmul.f32 0.03846154, %v409_v6 }
 0x2d3   : > { %775 = vrot.lane.b32.xlu2 %v773_v34, %s1343_s27 }
 0x2d6   : > { %v564_v38 = vpop.permute.xlu0 %563 }
 0x2d7   : > { %v568_v9 = vadd.f32 %v564_v38, %v551_v35 }
 0x2d9   : > { %571 = vst.msk [vmem:[#allocation2 + $0x9] sm:$0xff] %vm569_vm1, %v568_v9 }
 0x2da   : > { %957 = vrot.lane.b32.xlu1 %v955_v40, %s1344_s30 }
 0x2db   : > { %902 = vrot.lane.b32.xlu2 %v898_v41, %s1343_s27 }
 0x2dc   : > { %v729_v52 = vpop.permute.xlu2 %728 }
 0x2dd   : > { %v733_v9 = vadd.f32 %v729_v52, %v1659_v7 }
 0x2e0   : > { %v618_v27 = vld [vmem:[#allocation2 + $0x2] sm:$0xff] }
 0x2e1   : > { %v613_v29 = vld [vmem:[#allocation2 + $0x8] sm:$0xff] }
 0x2e2   : > { %v615_v34 = vld [vmem:[#allocation2 + $0x9] sm:$0xff] }
 0x2e3   : > { %914 = vrot.lane.b32.xlu2 %v910_v25, %s1344_s30  ;;  %v622_v25 = vmul.f32 %v1475_v10, %v1846_v62  ;;  %v617_v12 = vadd.f32 %v615_v34, %v613_v29 }
 0x2e4   : > { %v741_v59 = vpop.permute.xlu2 %740 }
 0x2e5   : > { %v745_v26 = vadd.f32 %v741_v59, %v733_v9  ;;  %v973_v9 = vmul.f32 %v1501_v17, %v1846_v62 }
 0x2e7   : > { %v727_v57 = vpop.permute.xlu1 %726 }
 0x2e8   : > { %v732_v4 = vadd.f32 %v727_v57, %v1654_v63 }
 0x2ef   : > { %v739_v16 = vpop.permute.xlu1 %738 }
 0x2f0   : > { %v744_v8 = vadd.f32 %v739_v16, %v732_v4 }
 0x2fc   : > { %v1836_v46 = vpop.permute.xlu0 %904 }
 0x315   : > { %v669_v50 = vpop.permute.xlu0 %668 }
 0x31d   : > { %v460_v48 = vpop.permute.xlu2 %459 }
 0x31e   : > { %v462_v53 = vadd.f32 %v460_v48, %v1672_v32 }
 0x324   : > { %v600_v19 = vpop.permute.xlu1 %599 }
 0x325   : > { %v470_v51 = vpop.permute.xlu2 %469  ;;  %v602_v24 = vadd.f32 %v600_v19, %v1678_v36  ;;  %v1854_v36 = vmin.f32 %v406_v2, 1.0 }
 0x326   : > { %v472_v56 = vadd.f32 %v470_v51, %v462_v53  ;;  %v909_v51 = vadd.f32 %v1836_v46, %v1664_v23 }
 0x328   : > { %v474_v60 = vmul.f32 %v1841_v55, %v472_v56 }
 0x32a   : > { %476 = vst.msk [vmem:[#allocation2] sm:$0x1] %vm475_vm2, %v474_v60 }
 0x32c   : > { %v782_v32 = vpop.permute.xlu0 %781  ;;  %v606_v1 = vpop.permute.xlu1 %605 }
 0x32d   : > { %v776_v3 = vpop.permute.xlu2 %775  ;;  %v608_v61 = vadd.f32 %v606_v1, %v602_v24 }
 0x32e   : > { %v778_v20 = vadd.f32 %v776_v3, %v1681_v39  ;;  %v410_v39 = vsub.f32 1.0, %v1854_v36 }
 0x32f   : > { %v610_v5 = vmul.f32 %v1848_v0, %v608_v61 }
 0x330   : > { %v784_v63 = vadd.f32 %v782_v32, %v778_v20  ;;  %v1868_v48 = vmul.f32 0.03846154, %v410_v39 }
 0x331   : > { %611 = vst.msk [vmem:[#allocation2 + $0x11] sm:$0x1] %vm475_vm2, %v610_v5  ;;  %v612_v30 = vld [vmem:[#allocation2] sm:$0xff]  ;;  %v798_v5 = vmul.f32 %v1505_v18, %v1854_v36 }
 0x332   : > { %v616_v31 = vadd.f32 %v614_v22, %v612_v30  ;;  %746 = vst.msk [vmem:[#allocation2 + $0x1] sm:$0xff] %vm569_vm1, %v744_v8  ;;  %v785_v44 = vmul.f32 %v784_v63, %v1848_v0  ;;  %v797_v8 = vmul.f32 %v1489_v14, %v1846_v62 }
 0x334   : > { %v839_v35 = vpop.permute.xlu0 %838  ;;  %v620_v37 = vadd.f32 %v618_v27, %v616_v31  ;;  %v663_v38 = vpop.permute.xlu1 %662 }
 0x335   : > { %v903_v40 = vpop.permute.xlu2 %902  ;;  %v665_v41 = vadd.f32 %v663_v38, %v1689_v42  ;;  %v841_v49 = vadd.f32 %v839_v35, %v1694_v45 }
 0x336   : > { %v624_v57 = vsub.f32 %v620_v37, %v1475_v10  ;;  %v623_v10 = vmul.f32 %v1477_v11, %v1854_v36  ;;  %v908_v45 = vadd.f32 %v903_v40, %v1692_v13 }
 0x337   : > { %v671_v43 = vadd.f32 %v669_v50, %v665_v41 }
 0x338   : > { %v619_v15 = vld [vmem:[#allocation2 + $0xa] sm:$0xff]  ;;  %v626_v16 = vmul.f32 %v624_v57, %v1858_v33 }
 0x339   : > { %v621_v7 = vadd.f32 %v619_v15, %v617_v12  ;;  %747 = vst.msk [vmem:[#allocation2 + $0x9] sm:$0xff] %vm569_vm1, %v745_v26  ;;  %v672_v42 = vmul.f32 %v671_v43, %v1841_v55  ;;  %v789_v4 = vld [vmem:[#allocation2 + $0x1] sm:$0xff] }
 0x33a   : > { %786 = vst.msk [vmem:[#allocation2 + $0x11] sm:$0x1] %vm475_vm2, %v785_v44  ;;  %v628_v52 = vadd.f32 %v626_v16, %v622_v25 }
 0x33b   : > { %v625_v59 = vsub.f32 %v621_v7, %v1477_v11  ;;  %673 = vst.msk [vmem:[#allocation2] sm:$0x1] %vm475_vm2, %v672_v42 }
 0x33c   : > { %630 = vst.msk [vmem:[%s1879_s20] sm:$0xff] %vm569_vm1, %v628_v52  ;;  %v845_v50 = vpop.permute.xlu1 %844  ;;  %v917_v19 = vpop.permute.xlu0 %916 }
 0x33d   : > { %v627_v53 = vmul.f32 %v625_v59, %v1868_v48  ;;  %v847_v54 = vadd.f32 %v845_v50, %v841_v49  ;;  %v915_v11 = vpop.permute.xlu2 %914  ;;  %v921_v58 = vadd.f32 %v917_v19, %v909_v51 }
 0x33e   : > { %v920_v3 = vadd.f32 %v915_v11, %v908_v45 }
 0x33f   : > { %v629_v56 = vadd.f32 %v627_v53, %v623_v10  ;;  %v848_v32 = vmul.f32 %v847_v54, %v1841_v55 }
 0x340   : > { %v793_v60 = vld [vmem:[#allocation2 + $0x2] sm:$0xff] }
 0x341   : > { %v788_v28 = vld [vmem:[#allocation2 + $0x8] sm:$0xff]  ;;  %631 = vst.msk [vmem:[%s1879_s20 + $0x8] sm:$0xff] %vm569_vm1, %v629_v56 }
 0x342   : > { %v790_v24 = vld [vmem:[#allocation2 + $0x9] sm:$0xff]  ;;  %v787_v61 = vld [vmem:[#allocation2] sm:$0xff] }
 0x343   : > { %v792_v1 = vadd.f32 %v790_v24, %v788_v28  ;;  %v794_v2 = vld [vmem:[#allocation2 + $0xa] sm:$0xff]  ;;  %v791_v23 = vadd.f32 %v789_v4, %v787_v61  ;;  %849 = vst.msk [vmem:[#allocation2] sm:$0x1] %vm475_vm2, %v848_v32 }
 0x344   : > { %923 = vst.msk [vmem:[#allocation2 + $0x9] sm:$0xff] %vm569_vm1, %v921_v58  ;;  %v952_v46 = vpop.permute.xlu1 %951 }
 0x345   : > { %v796_v13 = vadd.f32 %v794_v2, %v792_v1  ;;  %922 = vst.msk [vmem:[#allocation2 + $0x1] sm:$0xff] %vm569_vm1, %v920_v3  ;;  %v795_v55 = vadd.f32 %v793_v60, %v791_v23  ;;  %v954_v31 = vadd.f32 %v952_v46, %v1706_v47 }
 0x347   : > { %v800_v6 = vsub.f32 %v796_v13, %v1505_v18  ;;  %v799_v20 = vsub.f32 %v795_v55, %v1489_v14 }
 0x349   : > { %v802_v22 = vmul.f32 %v800_v6, %v1868_v48  ;;  %v801_v27 = vmul.f32 %v799_v20, %v1858_v33 }
 0x34b   : > { %v804_v29 = vadd.f32 %v802_v22, %v798_v5  ;;  %v803_v30 = vadd.f32 %v801_v27, %v797_v8  ;;  %v966_v57 = vld [vmem:[#allocation2 + $0x9] sm:$0xff] }
 0x34c   : > { %v963_v63 = vld [vmem:[#allocation2] sm:$0xff]  ;;  %v958_v18 = vpop.permute.xlu1 %957  ;;  %v964_v41 = vld [vmem:[#allocation2 + $0x8] sm:$0xff] }
 0x34d   : > { %1194 = vst.msk [vmem:[%s1879_s20 + $0x18] sm:$0xff] %vm569_vm1, %v804_v29  ;;  %v965_v34 = vld [vmem:[#allocation2 + $0x1] sm:$0xff]  ;;  %v960_v38 = vadd.f32 %v958_v18, %v954_v31  ;;  %v968_v26 = vadd.f32 %v966_v57, %v964_v41 }
 0x34e   : > { %v967_v35 = vadd.f32 %v965_v34, %v963_v63  ;;  %1193 = vst.msk [vmem:[%s1879_s20 + $0x10] sm:$0xff] %vm569_vm1, %v803_v30  ;;  %v969_v37 = vld [vmem:[#allocation2 + $0x2] sm:$0xff] }
 0x34f   : > { %v961_v39 = vmul.f32 %v960_v38, %v1848_v0  ;;  %v974_v0 = vmul.f32 %v1518_v21, %v1854_v36  ;;  %v1034_v36 = vld [vmem:[%s1879_s20] sm:$0xff] (%p1423_p6) }
 0x350   : > { %v971_v14 = vadd.f32 %v969_v37, %v967_v35  ;;  %1035 = vst [vmem:[%s995_s7] sm:$0xff] (%p1423_p6), %v1034_v36 }
 0x351   : > { %962 = vst.msk [vmem:[#allocation2 + $0x11] sm:$0x1] %vm475_vm2, %v961_v39 }
 0x352   : > { %v975_v47 = vsub.f32 %v971_v14, %v1501_v17 }
 0x354   : > { %v977_v40 = vmul.f32 %v975_v47, %v1858_v33  ;;  %v1040_v15 = vld [vmem:[%s1879_s20 + $0x18] sm:$0xff] (%p1423_p6) }
 0x355   : > { %v1038_v33 = vld [vmem:[%s1879_s20 + $0x10] sm:$0xff] (%p1423_p6)  ;;  %1041 = vst [vmem:[%s995_s7 + $0x28] sm:$0xff] (%p1423_p6), %v1040_v15 }
 0x356   : > { %v979_v25 = vadd.f32 %v977_v40, %v973_v9  ;;  %1039 = vst [vmem:[%s995_s7 + $0x20] sm:$0xff] (%p1423_p6), %v1038_v33 }
 0x358   : > { %1197 = vst.msk [vmem:[%s1879_s20 + $0x20] sm:$0xff] %vm569_vm1, %v979_v25  ;;  %v970_v12 = vld [vmem:[#allocation2 + $0xa] sm:$0xff] }
 0x359   : > { %v972_v43 = vadd.f32 %v970_v12, %v968_v26 }
 0x35b   : > { %v976_v44 = vsub.f32 %v972_v43, %v1518_v21  ;;  %v1036_v21 = vld [vmem:[%s1879_s20 + $0x8] sm:$0xff] (%p1423_p6) }
 0x35c   : > { %1037 = vst [vmem:[%s995_s7 + $0x8] sm:$0xff] (%p1423_p6), %v1036_v21 }
 0x35d   : > { %v978_v62 = vmul.f32 %v976_v44, %v1868_v48  ;;  %990 = sbr.rel (!%p1423_p6) target bundleno = 874 (0x36a), region = 82 }
 0x35f   : > { %v980_v17 = vadd.f32 %v978_v62, %v974_v0  ;;  %v1042_v16 = vld [vmem:[%s1879_s20 + $0x20] sm:$0xff] (%p1423_p6) }
 0x360   : > { %1043 = vst [vmem:[%s995_s7 + $0x40] sm:$0xff] (%p1423_p6), %v1042_v16 }
 0x361   : > { %1198 = vst.msk [vmem:[%s1879_s20 + $0x28] sm:$0xff] %vm569_vm1, %v980_v17 }
 0x368   : > { %v1044_v48 = vld [vmem:[%s1879_s20 + $0x28] sm:$0xff] }
 0x369   : > { %1045 = vst [vmem:[%s995_s7 + $0x48] sm:$0xff] %v1044_v48 }
 0x36a PF: > { %s15_s24 = sadd.s32 1, %s1334_s24   ;;  %s1965_s18 = smov %s1314_s19 }
 0x36b   : > { %p12_p3 = scmp.ge.s32.totalorder %s15_s24, 6   ;;  %s1966_s19 = smov %s1431_s8 }
 0x36c   : > { %s1967_s20 = smov %s1326_s22  ;;  %s1968_s21 = smov %s1330_s23 }
 0x36d   : > { %s1969_s22 = smov %s1972_s25  ;;  %s1970_s23 = smov %s1976_s26 }
 0x36e   :  { %14 = sbr.rel (!%p12_p3) target bundleno = 4 (0x4), region = 164 }

</bundles_post_ra>
